<compile_context>
chip_gen: v6e
topology: v6e:2x2x1
jax: 0.10.0
libtpu: 0.0.40
codegen_flags: <defaults>
</compile_context>

<pallas_src>
import math
import functools

import jax
import jax.numpy as jnp
from jax.experimental import pallas as pl
from jax.experimental.pallas import tpu as pltpu


def _round_up(x: int, m: int) -> int:
    return ((x + m - 1) // m) * m


def _pick_tk(in_features: int, max_tk: int) -> int:
    """Largest multiple-of-128 exact divisor of in_features that is <= max_tk.

    Falls back to the full in_features (no K split) if none exists — the
    reduction axis must tile exactly, otherwise out-of-bounds garbage would
    contaminate the accumulation.
    """
    if in_features <= max_tk:
        return in_features
    for cand in range(max_tk // 128, 0, -1):
        t = cand * 128
        if in_features % t == 0:
            return t
    return in_features


def _lora_kernel(x_ref, a_ref, b_ref, o_ref, xa_ref, *, scaling):
    # x_ref : (tm, tk)          native dtype (cast to bf16 here, not in wrapper)
    # a_ref : (tk, r_pad)       bf16
    # b_ref : (r_pad, out_pad)  bf16 (grid-invariant)
    # o_ref : (tm, out_pad)     out dtype
    # xa_ref: (tm, r_pad)       f32 VMEM scratch, persists across the k axis
    k = pl.program_id(1)

    @pl.when(k == 0)
    def _():
        xa_ref[...] = jnp.zeros_like(xa_ref)

    # First matmul: issued exactly once per (row tile, K tile); accumulated in
    # f32 and reused for the full out_features width (no recompute per j).
    xa_ref[...] += jnp.dot(x_ref[...].astype(jnp.bfloat16), a_ref[...],
                           preferred_element_type=jnp.float32)

    @pl.when(k == pl.num_programs(1) - 1)
    def _():
        out = jnp.dot(xa_ref[...].astype(jnp.bfloat16), b_ref[...],
                      preferred_element_type=jnp.float32)
        o_ref[...] = (out * scaling).astype(o_ref.dtype)


def lora_forward(x, lora_A, lora_B, scaling, *, tm=512, tk=None, out_dtype=None):
    """Pallas LoRA forward: view(-1, in) @ A @ B * scaling, reshaped back.

    tm: row tile (default 512; auto-shrunk to fit the per-generation VMEM
        budget — v7x lands around 256 for large in/out_features).
    tk: in_features tile; must divide in_features and be a multiple of 128
        (or equal in_features).  Default: exact divisor <= 8192.
    out_dtype: output dtype (default x.dtype); pass jnp.bfloat16 to halve the
        writeback when the caller adds the delta to a bf16 base projection.
    """
    in_features, rank = lora_A.shape
    out_features = lora_B.shape[1]
    batch_shape = x.shape[:-1]
    out_dtype = x.dtype if out_dtype is None else out_dtype
    scaling = float(scaling)  # static Python float required (not a traced scalar)

    x_flat = x.reshape(-1, in_features)  # no cast, no pad — streamed as-is
    M = x_flat.shape[0]
    x_itemsize = jnp.dtype(x_flat.dtype).itemsize
    out_itemsize = jnp.dtype(out_dtype).itemsize

    out_pad = _round_up(out_features, 128)   # lane-dense stores (full vst)
    r_pad = _round_up(rank, 128)             # lane-dense xa / full MXU K pass

    # --- generation-aware VMEM budget -------------------------------------
    try:
        vmem_cap = pltpu.get_tpu_info().vmem_capacity_bytes
    except Exception:
        vmem_cap = 64 << 20                  # conservative (v7x per-TC size)
    vmem_budget = int(0.75 * vmem_cap)       # leave headroom for Mosaic scratch

    def vmem_est(tm_, tk_):
        return (2 * tm_ * tk_ * x_itemsize           # x tile (native dtype), 2 bufs
                + 2 * tk_ * r_pad * 2                # A tile bf16, counted 2 bufs
                + 2 * r_pad * out_pad * 2            # B bf16 (invariant; 2 bufs to be safe)
                + 2 * tm_ * out_pad * out_itemsize   # out tile, 2 bufs
                + tm_ * r_pad * (4 + 2))             # xa f32 scratch + staged bf16 copy

    # --- tile sizing -------------------------------------------------------
    tm = min(tm, _round_up(M, 8))
    if tk is None:
        tk = _pick_tk(in_features, 8192)
    elif in_features % tk != 0 or (tk != in_features and tk % 128 != 0):
        tk = in_features

    # Shrink tk first (keep tm large — that's what the K split is for), then tm.
    while vmem_est(tm, tk) > vmem_budget:
        if tk > 1024:
            new_tk = _pick_tk(in_features, tk // 2)
            if new_tk < tk:
                tk = new_tk
                continue
        if tm > 128:
            tm //= 2
            continue
        break

    n_k = in_features // tk

    grid_i = pl.cdiv(M, tm)
    # v7x megacore: the "parallel" row axis needs >= 2 steps or one TC idles.
    if grid_i == 1 and M > 8:
        tm = _round_up(pl.cdiv(M, 2), 8)
        grid_i = pl.cdiv(M, tm)

    # --- cast/pad the tiny parameters (one-time, negligible) ---------------
    a_bf = jnp.pad(lora_A.astype(jnp.bfloat16), ((0, 0), (0, r_pad - rank)))
    b_bf = jnp.pad(lora_B.astype(jnp.bfloat16),
                   ((0, r_pad - rank), (0, out_pad - out_features)))

    vmem_limit_bytes = int(min(max(vmem_est(tm, tk) + (4 << 20), 32 << 20),
                               vmem_budget))

    kernel = functools.partial(_lora_kernel, scaling=scaling)

    out_flat = pl.pallas_call(
        kernel,
        out_shape=jax.ShapeDtypeStruct((M, out_pad), out_dtype),
        grid_spec=pltpu.PrefetchScalarGridSpec(
            num_scalar_prefetch=0,
            grid=(grid_i, n_k),
            in_specs=[
                pl.BlockSpec((tm, tk), lambda i, k: (i, k)),        # x (native dtype)
                pl.BlockSpec((tk, r_pad), lambda i, k: (k, 0)),     # A (bf16)
                pl.BlockSpec((r_pad, out_pad), lambda i, k: (0, 0)),  # B (bf16, invariant)
            ],
            out_specs=pl.BlockSpec((tm, out_pad), lambda i, k: (i, 0)),
            scratch_shapes=[pltpu.VMEM((tm, r_pad), jnp.float32)],
        ),
        compiler_params=pltpu.CompilerParams(
            dimension_semantics=("parallel", "arbitrary"),
            vmem_limit_bytes=vmem_limit_bytes,
        ),
    )(x_flat, a_bf, b_bf)

    out_flat = out_flat[:, :out_features]
    return out_flat.reshape(*batch_shape, out_features)


def init_lora_params(key, in_features, out_features, rank):
    """Deterministic init matching the PyTorch module's reset_parameters():
       lora_A ~ kaiming_uniform_(a=sqrt(5)) => U(-1/sqrt(rank), 1/sqrt(rank))
       lora_B = zeros
    """
    bound = 1.0 / math.sqrt(rank)
    lora_A = jax.random.uniform(
        key, (in_features, rank), dtype=jnp.float32, minval=-bound, maxval=bound)
    lora_B = jnp.zeros((rank, out_features), dtype=jnp.float32)
    return lora_A, lora_B


if __name__ == "__main__":
    # Small shapes consistent with the module's forward (last dim = in_features).
    batch, seq = 2, 8
    in_features, out_features, rank, alpha = 32, 32, 4, 32.0
    scaling = alpha / rank

    key = jax.random.PRNGKey(0)
    kx, ka, kb = jax.random.split(key, 3)

    x = jax.random.normal(kx, (batch, seq, in_features), dtype=jnp.float32)
    lora_A, _ = init_lora_params(ka, in_features, out_features, rank)
    # Use a NONZERO lora_B for the self-test (module init is zeros, which would
    # make the check trivially pass without exercising the second matmul,
    # scaling, or output layout).
    lora_B = jax.random.uniform(
        kb, (rank, out_features), dtype=jnp.float32, minval=-0.5, maxval=0.5)

    out = lora_forward(x, lora_A, lora_B, scaling)
    out = jax.block_until_ready(out)
    assert out.shape == (batch, seq, out_features)

    # Reference 1: same bf16-operand / f32-accumulate math in plain JAX
    # (exactly matches the kernel when there is a single K tile, as here).
    x_bf = x.reshape(-1, in_features).astype(jnp.bfloat16)
    xa_ref = jnp.dot(x_bf, lora_A.astype(jnp.bfloat16),
                     preferred_element_type=jnp.float32)
    ref_flat = jnp.dot(xa_ref.astype(jnp.bfloat16), lora_B.astype(jnp.bfloat16),
                       preferred_element_type=jnp.float32) * scaling
    ref_bf16 = ref_flat.reshape(batch, seq, out_features)
    assert jnp.allclose(out, ref_bf16, atol=1e-3, rtol=1e-3), \
        "mismatch vs bf16-matched reference"

    # Reference 2: full-f32 reference (loose tolerance for bf16 operand cast).
    ref_f32 = (x.reshape(-1, in_features) @ lora_A @ lora_B * scaling).reshape(
        batch, seq, out_features)
    assert jnp.allclose(out, ref_f32, atol=0.3, rtol=0.1), \
        "mismatch vs f32 reference"

    print("KERNEL_OK")
</pallas_src>

<mosaic_0001>
module attributes {stable_mosaic.version = 11 : i64} {
  func.func @_lora_kernel(%arg0: i32, %arg1: i32, %arg2: memref<8x32xf32, #tpu.memory_space<vmem>>, %arg3: memref<32x128xbf16, #tpu.memory_space<vmem>>, %arg4: memref<128x128xbf16, #tpu.memory_space<vmem>>, %arg5: memref<8x128xf32, #tpu.memory_space<vmem>>, %arg6: memref<8x128xf32, #tpu.memory_space<vmem>>) attributes {dimension_semantics = [#tpu.dimension_semantics<parallel>, #tpu.dimension_semantics<arbitrary>], iteration_bounds = array<i64: 2, 1>, scalar_prefetch = 0 : i64, scratch_operands = 1 : i64, tpu.core_type = #tpu.core_type<tc>, window_params = [{transform_indices = @transform_0, window_bounds = array<i64: 8, 32>}, {transform_indices = @transform_1, window_bounds = array<i64: 32, 128>}, {pipeline_mode = #tpu.pipeline_mode<synchronous>, transform_indices = @transform_2, window_bounds = array<i64: 128, 128>}, {transform_indices = @transform_3, window_bounds = array<i64: 8, 128>}]} {
    %c0_i32 = arith.constant 0 : i32
    %0 = arith.cmpi eq, %arg1, %c0_i32 : i32
    %1 = arith.extui %0 : i1 to i32
    %c0_i32_0 = arith.constant 0 : i32
    %2 = arith.cmpi ne, %1, %c0_i32_0 : i32
    scf.if %2 {
      %cst_10 = arith.constant 0.000000e+00 : f32
      %13 = vector.broadcast %cst_10 : f32 to vector<8x128xf32>
      %c0_11 = arith.constant 0 : index
      %c0_12 = arith.constant 0 : index
      %14 = vector.load %arg6[%c0_11, %c0_12] : memref<8x128xf32, #tpu.memory_space<vmem>>, vector<8x128xf32>
      tpu.vector_store %arg6[%c0_11, %c0_12], %13 {strides = array<i32>} : memref<8x128xf32, #tpu.memory_space<vmem>>, vector<8x128xf32>,
    } else {
    }
    %c0 = arith.constant 0 : index
    %c0_1 = arith.constant 0 : index
    %3 = vector.load %arg6[%c0, %c0_1] : memref<8x128xf32, #tpu.memory_space<vmem>>, vector<8x128xf32>
    %c0_2 = arith.constant 0 : index
    %c0_3 = arith.constant 0 : index
    %4 = vector.load %arg2[%c0_2, %c0_3] : memref<8x32xf32, #tpu.memory_space<vmem>>, vector<8x32xf32>
    %5 = arith.truncf %4 : vector<8x32xf32> to vector<8x32xbf16>
    %c0_4 = arith.constant 0 : index
    %c0_5 = arith.constant 0 : index
    %6 = vector.load %arg3[%c0_4, %c0_5] : memref<32x128xbf16, #tpu.memory_space<vmem>>, vector<32x128xbf16>
    %cst = arith.constant dense<0.000000e+00> : vector<8x128xf32>
    %7 = tpu.matmul %5, %6, %cst {dimension_numbers = #tpu.dot_dimension_numbers<[1], [0], [0], [1], [0, 0, 1, 1], [], []>} : vector<8x32xbf16>, vector<32x128xbf16>, vector<8x128xf32> -> vector<8x128xf32>
    %8 = arith.addf %3, %7 : vector<8x128xf32>
    %c0_6 = arith.constant 0 : index
    %c0_7 = arith.constant 0 : index
    %9 = vector.load %arg6[%c0_6, %c0_7] : memref<8x128xf32, #tpu.memory_space<vmem>>, vector<8x128xf32>
    tpu.vector_store %arg6[%c0_6, %c0_7], %8 {strides = array<i32>} : memref<8x128xf32, #tpu.memory_space<vmem>>, vector<8x128xf32>,
    %c0_i32_8 = arith.constant 0 : i32
    %10 = arith.cmpi eq, %arg1, %c0_i32_8 : i32
    %11 = arith.extui %10 : i1 to i32
    %c0_i32_9 = arith.constant 0 : i32
    %12 = arith.cmpi ne, %11, %c0_i32_9 : i32
    scf.if %12 {
      %c0_10 = arith.constant 0 : index
      %c0_11 = arith.constant 0 : index
      %13 = vector.load %arg6[%c0_10, %c0_11] : memref<8x128xf32, #tpu.memory_space<vmem>>, vector<8x128xf32>
      %14 = arith.truncf %13 : vector<8x128xf32> to vector<8x128xbf16>
      %c0_12 = arith.constant 0 : index
      %c0_13 = arith.constant 0 : index
      %15 = vector.load %arg4[%c0_12, %c0_13] : memref<128x128xbf16, #tpu.memory_space<vmem>>, vector<128x128xbf16>
      %cst_14 = arith.constant dense<0.000000e+00> : vector<8x128xf32>
      %16 = tpu.matmul %14, %15, %cst_14 {dimension_numbers = #tpu.dot_dimension_numbers<[1], [0], [0], [1], [0, 0, 1, 1], [], []>} : vector<8x128xbf16>, vector<128x128xbf16>, vector<8x128xf32> -> vector<8x128xf32>
      %cst_15 = arith.constant 8.000000e+00 : f32
      %17 = vector.broadcast %cst_15 : f32 to vector<8x128xf32>
      %18 = arith.mulf %16, %17 : vector<8x128xf32>
      %c0_16 = arith.constant 0 : index
      %c0_17 = arith.constant 0 : index
      %19 = vector.load %arg5[%c0_16, %c0_17] : memref<8x128xf32, #tpu.memory_space<vmem>>, vector<8x128xf32>
      tpu.vector_store %arg5[%c0_16, %c0_17], %18 {strides = array<i32>} : memref<8x128xf32, #tpu.memory_space<vmem>>, vector<8x128xf32>,
    } else {
    }
    return
  }
  func.func @transform_0(%arg0: i32, %arg1: i32) -> (i32, i32) {
    %c0_i32 = arith.constant 0 : i32
    return %arg0, %arg1 : i32, i32
  }
  func.func @transform_1(%arg0: i32, %arg1: i32) -> (i32, i32) {
    %c0_i32 = arith.constant 0 : i32
    %c0_i32_0 = arith.constant 0 : i32
    return %arg1, %c0_i32 : i32, i32
  }
  func.func @transform_2(%arg0: i32, %arg1: i32) -> (i32, i32) {
    %c0_i32 = arith.constant 0 : i32
    %c0_i32_0 = arith.constant 0 : i32
    %c0_i32_1 = arith.constant 0 : i32
    return %c0_i32, %c0_i32_0 : i32, i32
  }
  func.func @transform_3(%arg0: i32, %arg1: i32) -> (i32, i32) {
    %c0_i32 = arith.constant 0 : i32
    %c0_i32_0 = arith.constant 0 : i32
    return %arg0, %c0_i32 : i32, i32
  }
}

</mosaic_0001>

<bundles_post_ra>
// kernel: tpu_custom_call.1
= control target key start
LH: loop header
LB: loop body
LE: loop exit
PB: predicated region body
PF: predicated region fallthrough
CT: control target
= control target key end

     0   :  { %8 = vsyncpa [#allocation4], 0  ;;  %s1084_s0 = inlined_call_operand.hbm [shape: f32[16,32], index: 0, kind: input, shape index: {}]   ;;  %s1085_s1 = inlined_call_operand.hbm [shape: bf16[32,128], index: 1, kind: input, shape index: {}]   ;;  %s1086_s2 = inlined_call_operand.hbm [shape: bf16[128,128], index: 2, kind: input, shape index: {}]   ;;  %s1087_s3 = inlined_call_operand.hbm [shape: f32[16,128], index: 3, kind: output, shape index: {}]  }
   0x1   :  { %10 = vsyncpa [#allocation4 + $0x1], 0 }
   0x2   :  { %11 = vsyncpa [#allocation7], 0 }
   0x3   :  { %12 = vsyncpa [#allocation5], 0 }
   0x4   :  { %14 = vsyncpa [#allocation5 + $0x1], 0  ;;  %s894_s12 = smov 0   ;;  %s896_s13 = smov 0  }
   0x5   :  { %s898_s14 = smov 0   ;;  %s900_s15 = smov 0  }
   0x6   :  { %s902_s16 = smov 0   ;;  %s904_s17 = smov 0  }
   0x7 LB: > { %s535_s18 = sadd.s32 4294967295, %s864_s17   ;;  %s536_s19 = sadd.s32 4294967294, %s864_s17   ;;  %s864_s17 = sphi %s904_s17, %s20_s17   ;;  %s860_s16 = sphi %s902_s16, %s1107_s16   ;;  %s856_s15 = sphi %s900_s15, %s1106_s15   ;;  %s852_s14 = sphi %s898_s14, %s1105_s14   ;;  %s848_s13 = sphi %s896_s13, %s1104_s13   ;;  %s844_s12 = sphi %s894_s12, %s1103_s12  }
   0x8   : > { %p54_p0 = scmp.ne.s32.totalorder %s848_s13, %s844_s12  ;;  %p928_p1 = scmp.eq.s32.totalorder %s535_s18, 0 }
   0x9   : > { %p932_p2 = scmp.eq.s32.totalorder %s535_s18, 1  ;;  %p131_p3 = scmp.eq.s32.totalorder %s536_s19, 1 }
   0xa   : > { %s1091_s20 = scalar_select %p928_p1, 1, 0 }
   0xb   : > { %p938_p4 = por %p928_p1, %p54_p0  ;;  %p537_p5 = scmp.ge.s32.totalorder %s864_s17, 1 }
   0xc   : > { %p943_p6 = por %p131_p3, %p54_p0  ;;  %p138_p7 = scmp.lt.s32.totalorder %s864_s17, 3 }
   0xd   : > { %s1093_s22 = scalar_select %p938_p4, 1, 0 }
   0xe   : > { %s1094_s23 = scalar_select %p943_p6, 1, 0 }
   0xf   : > { %p948_p8 = pnand %p537_p5, %p138_p7  ;;  %s866_s25 = smov [#allocation6]  }
  0x10   : > { %s153_s26 = sshll.u32 %s866_s25, 4  ;;  %s867_s28 = smov [#allocation8]   ;;  %s154_s26 = int_to_ptr.vmem [resolvable:$true] %s153_s26 }
  0x11   : > { %p615_p9 = pneg %p948_p8  ;;  %s166_s29 = sshll.u32 %s867_s28, 4  ;;  %s167_s29 = int_to_ptr.vmem [resolvable:$true] %s166_s29 }
  0x12   : > { %s711_s30 = scalar_lea.vmem %s154_s26, 256  ;;  %p719_p5 = scmp.lt.s32.totalorder %s154_s26, %s154_s26 }
  0x13   : > { %p957_p11 = pnand %p615_p9, %p928_p1  ;;  %p712_p13 = scmp.ne.s32.totalorder %s154_s26, %s711_s30 }
  0x14   : > { %p720_p7 = scmp.lt.s32.totalorder %s711_s30, %s711_s30 }
  0x15   : > { %p702_p12 = pneg %p957_p11 }
  0x16   : > { %p721_p10 = por %p720_p7, %p719_p5 }
  0x17   : > { %p714_p0 = pnand %p712_p13, %p702_p12 }
  0x19   : > { %p715_p3 = pneg %p714_p0 }
  0x1b   : > { %p722_p9 = pnand %p721_p10, %p715_p3 }
  0x1d   : > { %725 = shalt.err (!%p722_p9)
}
  0x1e   : > { %s868_s4 = smov 64   ;;  %s869_s5 = smov 4  }
  0x1f   : > { %618 = dma.hbm_to_vmem [thread:$0]  (!%p957_p11), %s1085_s1, 256, %s154_s26, [#allocation7], %s868_s4, %s868_s4, %s869_s5  }
  0x20   : > { %s737_s8 = scalar_lea.vmem %s167_s29, 1024  ;;  %p745_p1 = scmp.lt.s32.totalorder %s167_s29, %s167_s29 }
  0x21   : > { %p738_p6 = scmp.ne.s32.totalorder %s167_s29, %s737_s8  ;;  %p746_p4 = scmp.lt.s32.totalorder %s737_s8, %s737_s8 }
  0x23   : > { %p740_p13 = pnand %p738_p6, %p702_p12  ;;  %p747_p5 = por %p746_p4, %p745_p1 }
  0x25   : > { %p741_p0 = pneg %p740_p13 }
  0x27   : > { %p748_p10 = pnand %p747_p5, %p741_p0 }
  0x29   : > { %751 = shalt.err (!%p748_p10)
}
  0x2a   : > { %621 = dma.hbm_to_vmem [thread:$0]  (!%p957_p11), %s1086_s2, 1024, %s167_s29, [#allocation7], %s868_s4, %s868_s4, %s869_s5  }
  0x2b   : > { %s32_s11 = sadd.s32 1, %s860_s16  ;;  %s41_s18 = sadd.s32 1, %s852_s14 }
  0x2c   : > { %p34_p1 = scmp.ge.s32.totalorder %s32_s11, 2  ;;  %p48_p4 = scmp.ne.s32.totalorder %s852_s14, %s848_s13 }
  0x2d   : > { %p49_p6 = scmp.eq.s32.totalorder %s864_s17, 0  ;;  %p632_p12 = scmp.lt.s32.totalorder %s864_s17, 2 }
  0x2e   : > { %s1109_s11 = smov (%p34_p1, %s32_s11), 0  ;;  %p989_p7 = por %p932_p2, %p48_p4 }
  0x2f   : > { %p50_p3 = por %p49_p6, %p48_p4  ;;  %s36_s25 = ssub.s32 %s860_s16, %s1109_s11 }
  0x30   : > { %s180_s26 = sand.u32 1, %s852_s14   ;;  %p39_p9 = scmp.eq.s32.totalorder %s36_s25, 0 }
  0x31   : > { %s541_s27 = sshll.u32 %s180_s26, 3  ;;  %s542_s28 = sshll.u32 %s860_s16, 7 }
  0x32   : > { %s998_s29 = scalar_select %p39_p9, %s852_s14, %s41_s18  }
  0x33   : > { %s190_s5 = scalar_lea.hbm %s1084_s0, %s542_s28  ;;  %s184_s6 = scalar_lea.vmem [#allocation3], %s541_s27 }
  0x34   : > { %s192_s7 = sshll.u32 %s184_s6, 4  ;;  %p1005_p11 = pnand %p632_p12, %p50_p3  ;;  %s193_s7 = int_to_ptr.vmem [resolvable:$true] %s192_s7 }
  0x35   : > { %s181_s8 = scalar_lea.sflag [#allocation4], %s180_s26  ;;  %s765_s9 = scalar_lea.vmem %s193_s7, 128 }
  0x36   : > { %p754_p2 = pneg %p1005_p11  ;;  %p766_p13 = scmp.ne.s32.totalorder %s193_s7, %s765_s9 }
  0x37   : > { %s870_s10 = smov [#allocation3]  }
  0x38   : > { %p768_p0 = pnand %p766_p13, %p754_p2  ;;  %s770_s18 = sshll.u32 %s870_s10, 4  ;;  %s771_s18 = int_to_ptr.vmem [resolvable:$false] %s770_s18 }
  0x39   : > { %s772_s25 = scalar_lea.vmem %s771_s18, 256  ;;  %p773_p10 = scmp.lt.s32.totalorder %s193_s7, %s771_s18 }
  0x3a   : > { %p769_p5 = pneg %p768_p0  ;;  %p774_p1 = scmp.lt.s32.totalorder %s772_s25, %s765_s9 }
  0x3c   : > { %p775_p4 = por %p774_p1, %p773_p10 }
  0x3e   : > { %p776_p6 = pnand %p775_p4, %p769_p5 }
  0x40   : > { %779 = shalt.err (!%p776_p6)
}
  0x41   : > { %625 = dma.hbm_to_vmem [thread:$0]  (!%p1005_p11), %s190_s5, 128, %s193_s7, %s181_s8  }
  0x42   : > { %201 = sbr.rel (%p948_p8) target bundleno = 489 (0x1e9), region = 32  ;;  %s1016_s26 = sand.u32 (!%p948_p8), 1, %s848_s13  }
  0x43   : > { %s544_s27 = sshll.u32 (!%p948_p8), %s1016_s26, 3  ;;  %s204_s28 = scalar_lea.sflag (!%p948_p8), [#allocation4], %s1016_s26 }
  0x44   : > { %s207_s30 = scalar_lea.vmem (!%p948_p8), [#allocation3], %s544_s27  ;;  %p1099_p12 = scmp.ne.s32.totalorder (!%p948_p8), %s1093_s22, 0 }
  0x47   : > { %831 = dma.done.wait (%p1099_p12), %s204_s28, 128  }
  0x48   : > { %833 = vsyncadd (%p1099_p12), %s204_s28, 4294967168  ;;  %p1100_p3 = scmp.ne.s32.totalorder %s1091_s20, 0 }
  0x4a   : > { %835 = dma.done.wait (%p1100_p3), [#allocation7], 1280  }
  0x4b   : > { %837 = vsyncadd (%p1100_p3), [#allocation7], 4294966016  ;;  %v871_v0 = vmov 0.0   ;;  %vm872_vm0 = vmmov 0   ;;  %v690_v1 = vld [vmem:[#allocation6 + $0x8] sm:$0xff]   ;;  %v691_v2 = vld [vmem:[#allocation6] sm:$0xff]  }
  0x4c   : > { %575 = vmatprep.subr.bf16.mxu0 %v871_v0  ;;  %579 = vmatprep.mubr.msk.bf16.mxu0 %vm872_vm0, %v871_v0  ;;  %v246_v3 = vld [vmem:[%s207_s30] sm:$0xff]  ;;  %v692_v4 = vld [vmem:[#allocation8 + $0x38] sm:$0xff]   ;;  %v693_v6 = vld [vmem:[#allocation8 + $0x30] sm:$0xff]   ;;  %vm264_vm1 = vcmask 261120   ;;  %s560_s20 = sshll.u32 %s856_s15, 7  ;;  %s237_s22 = scalar_lea.vmem [#allocation9], %s544_s27 }
  0x4d   : > { %583 = vmatprep.subr.bf16.mxu1 %v871_v0  ;;  %599 = vmatprep.mubr.msk.bf16.mxu1 %vm872_vm0, %v871_v0  ;;  %v247_v5 = vpack.c.bf16 %v246_v3, %v246_v3  ;;  %v694_v7 = vld [vmem:[#allocation8 + $0x28] sm:$0xff]   ;;  %v695_v8 = vld [vmem:[#allocation8 + $0x20] sm:$0xff]   ;;  %v696_v9 = vld [vmem:[#allocation8 + $0x18] sm:$0xff]   ;;  %s435_s24 = sshll.u32 %s237_s22, 4  ;;  %s1036_s6 = scalar_lea.hbm %s1087_s3, %s560_s20  ;;  %s1038_s24 = int_to_ptr.vmem [resolvable:$true] %s435_s24 }
  0x4e   : > { %576 = vmatpush3.bf16.msra.mxu0 %v690_v1  ;;  %584 = vmatpush3.bf16.msra.mxu1 %v692_v4  ;;  %v697_v10 = vld [vmem:[#allocation8 + $0x10] sm:$0xff]   ;;  %v698_v11 = vld [vmem:[#allocation8 + $0x8] sm:$0xff]   ;;  %v699_v12 = vld [vmem:[#allocation8] sm:$0xff]   ;;  %s422_s7 = scalar_lea.sflag [#allocation5], %s1016_s26  ;;  %s780_s15 = scalar_lea.vmem %s1038_s24, 128 }
  0x4f   : > { %577 = vmatprep.subr.bf16.mxu0 %v871_v0  ;;  %585 = vmatprep.subr.bf16.mxu1 %v871_v0  ;;  %p781_p8 = scmp.ne.s32.totalorder %s1038_s24, %s780_s15  ;;  %s873_s21 = smov [#allocation9]  }
  0x50   : > { %s784_s8 = sshll.u32 %s873_s21, 4  ;;  %s785_s8 = int_to_ptr.vmem [resolvable:$false] %s784_s8 }
  0x51   : > { %p782_p9 = pnand %p781_p8, %p989_p7  ;;  %s786_s9 = scalar_lea.vmem %s785_s8, 256 }
  0x52   : > { %578 = vmatpush3.bf16.msra.mxu0 %v691_v2  ;;  %586 = vmatpush3.bf16.msra.mxu1 %v693_v6  ;;  %p787_p2 = scmp.lt.s32.totalorder %s1038_s24, %s785_s8  ;;  %p788_p13 = scmp.lt.s32.totalorder %s786_s9, %s780_s15 }
  0x53   : > { %587 = vmatprep.subr.bf16.mxu1 %v871_v0  ;;  %p783_p11 = pneg %p782_p9 }
  0x54   : > { %p789_p0 = por %p788_p13, %p787_p2 }
  0x55   : > { %580 = vmatmul.mubr.msk.bf16.vlgmr.msra.gmra.mxu0 %vm264_vm1, %v247_v5 }
  0x56   : > { %588 = vmatpush3.bf16.msra.mxu1 %v694_v7  ;;  %p790_p5 = pnand %p789_p0, %p783_p11 }
  0x57   : > { %589 = vmatprep.subr.bf16.mxu1 %v871_v0 }
  0x5a   : > { %590 = vmatpush3.bf16.msra.mxu1 %v695_v8 }
  0x5b   : > { %591 = vmatprep.subr.bf16.mxu1 %v871_v0 }
  0x5e   : > { %592 = vmatpush3.bf16.msra.mxu1 %v696_v9 }
  0x5f   : > { %593 = vmatprep.subr.bf16.mxu1 %v871_v0 }
  0x62   : > { %594 = vmatpush3.bf16.msra.mxu1 %v697_v10 }
  0x63   : > { %595 = vmatprep.subr.bf16.mxu1 %v871_v0 }
  0x66   : > { %596 = vmatpush3.bf16.msra.mxu1 %v698_v11 }
  0x67   : > { %597 = vmatprep.subr.bf16.mxu1 %v871_v0 }
  0x6a   : > { %598 = vmatpush3.bf16.msra.mxu1 %v699_v12 }
 0x115   : > { %v302_v13 = vpop.f32.mrf.mxu0 }
 0x116   : > { %v314_v14 = vpack.c.bf16 %v302_v13, %v302_v13 }
 0x117   : > { %v581_v15 = vpop.f32.mrf.mxu0 }
 0x118   : > { %600 = vmatmul.mubr.bf16.vlgmr.msra.gmra.mxu1 %v314_v14 }
 0x119   : > { %v305_v16 = vpop.f32.mrf.mxu0 }
 0x11b   : > { %v582_v17 = vpop.f32.mrf.mxu0 }
 0x1d8   : > { %v413_v18 = vpop.f32.mrf.mxu1 }
 0x1d9   : > { %v419_v19 = vmul.f32 8.0, %v413_v18 }
 0x1da   : > { %v601_v20 = vpop.f32.mrf.mxu1 }
 0x1db   : > { %420 = vst [vmem:[%s237_s22] sm:$0xff] %v419_v19 }
 0x1dc   : > { %v416_v21 = vpop.f32.mrf.mxu1 }
 0x1dd   : > { %793 = shalt.err (!%p790_p5)
}
 0x1de   : > { %s794_s10 = scalar_lea.hbm %s1036_s6, 128  ;;  %s798_s26 = scalar_lea.hbm %s1087_s3, 256 }
 0x1df   : > { %p795_p10 = scmp.ne.s32.totalorder %s1036_s6, %s794_s10  ;;  %p799_p6 = scmp.lt.s32.totalorder %s1036_s6, %s1087_s3 }
 0x1e0   : > { %p800_p12 = scmp.lt.s32.totalorder %s798_s26, %s794_s10 }
 0x1e1   : > { %p796_p1 = pnand %p795_p10, %p989_p7 }
 0x1e2   : > { %p801_p3 = por %p800_p12, %p799_p6 }
 0x1e3   : > { %p797_p4 = pneg %p796_p1 }
 0x1e5   : > { %p802_p8 = pnand %p801_p3, %p797_p4 }
 0x1e7   : > { %805 = shalt.err (!%p802_p8)
}
 0x1e8   : > { %613 = dma.vmem_to_hbm [thread:$0]  (%p989_p7), %s1038_s24, 128, %s1036_s6, %s422_s7   ;;  %v602_v22 = vpop.f32.mrf.mxu1 }
 0x1e9 PF: > { %s447_s30 = sand.u32 1, %s844_s12   ;;  %p1101_p9 = scmp.ne.s32.totalorder %s1094_s23, 0 }
 0x1ea   : > { %p1102_p11 = scmp.ge.s32.totalorder %s864_s17, 2  ;;  %s448_s20 = scalar_lea.sflag [#allocation5], %s447_s30 }
 0x1ec   : > { %p627_p2 = pnand %p1102_p11, %p1101_p9 }
 0x1ee   : > { %p628_p13 = pneg %p627_p2 }
 0x1f0   : > { %839 = dma.done.wait (%p628_p13), %s448_s20, 128  }
 0x1f1   : > { %841 = vsyncadd (%p628_p13), %s448_s20, 4294967168  ;;  %s20_s17 = sadd.s32 1, %s864_s17   ;;  %s1103_s12 = smov %s848_s13 }
 0x1f2   : > { %p17_p0 = scmp.ge.s32.totalorder %s20_s17, 4   ;;  %s1104_s13 = smov %s852_s14 }
 0x1f3   : > { %s1105_s14 = smov %s998_s29  ;;  %s1106_s15 = smov %s860_s16 }
 0x1f4   : > { %s1107_s16 = smov %s1109_s11  ;;  %19 = sbr.rel (!%p17_p0) target bundleno = 7 (0x7), region = 94 }
 0x1f9   :  { %453 = vsyncpa [#allocation4], 1 }
 0x1fa   :  { %455 = vsyncpa [#allocation4 + $0x1], 1 }
 0x1fb   :  { %456 = vsyncpa [#allocation7], 1 }
 0x1fc   :  { %457 = vsyncpa [#allocation5], 1 }
 0x1fd   :  { %459 = vsyncpa [#allocation5 + $0x1], 1 }

</bundles_post_ra>
